<compile_context>
chip_gen: v7x
topology: tpu7x:2x2x1
jax: 0.10.0
libtpu: 0.0.40
codegen_flags: <defaults>
</compile_context>

<pallas_src>
import functools

import jax
import jax.numpy as jnp
from jax.experimental import pallas as pl
from jax.experimental.pallas import tpu as pltpu  # noqa: F401  (TPU backend)


# ------------------------------ helpers ------------------------------------

def _round_up(x, m):
    return ((x + m - 1) // m) * m


def _full_spec(shape):
    # Whole array resident in VMEM (single grid point, shapes are small here).
    return pl.BlockSpec(shape, lambda: (0,) * len(shape))


# --------------------------- fused Pallas kernel ----------------------------

def _fused_gnn_kernel(x0_ref, x1_ref, wenc_ref, benc_ref, a_ref,
                      w_ref, b_ref, gamma_ref, beta_ref,
                      pmean_ref, pmaskt_ref,
                      hnode_ref, gmean_ref, gmax_ref,
                      *, layer_dims, n_real, num_graphs, eps=1e-5):
    n_pad, f_pad = hnode_ref.shape
    g_pad = gmax_ref.shape[0]
    num_layer = len(layer_dims)

    # --- node encoder: Linear(2, input_dim) as two VPU broadcast FMAs -------
    # (a K=2 MXU contraction would waste an entire systolic pass).
    wenc = wenc_ref[...]                                       # (2, f_pad)
    h = (x0_ref[...] * wenc[0:1, :]
         + x1_ref[...] * wenc[1:2, :]
         + benc_ref[...])                                      # (n_pad, f_pad)

    # Normalized adjacency: loaded once, resident across every layer.
    a = a_ref[...]                                             # (n_pad, n_pad)
    a_rowsum = jnp.sum(a, axis=1, keepdims=True)               # (n_pad, 1)

    # BatchNorm statistics must only see the n_real real rows.
    row_ids = jax.lax.broadcasted_iota(jnp.int32, (n_pad, 1), 0)
    row_mask = row_ids < n_real
    inv_n = 1.0 / float(n_real)

    for layer, (fin, fout) in enumerate(layer_dims):
        w = w_ref[layer]                                       # (f_pad, f_pad)
        b = b_ref[layer]                                       # (1, f_pad)
        if fin < fout:
            # Reassociated: (A @ h) @ W + rowsum(A) * b  -- fewer MXU FLOPs at
            # the logical widths when Fin < Fout, identical math.
            ah = jnp.dot(a, h, preferred_element_type=jnp.float32)
            agg = (jnp.dot(ah, w, preferred_element_type=jnp.float32)
                   + a_rowsum * b)
        else:
            # A @ (h @ W + b)
            hw = jnp.dot(h, w, preferred_element_type=jnp.float32) + b
            agg = jnp.dot(a, hw, preferred_element_type=jnp.float32)

        # BatchNorm1d, training-mode batch stats (biased variance, eps=1e-5).
        # Padded rows of `agg` are exactly zero so the sum is over real rows;
        # the variance is explicitly masked.
        mean = jnp.sum(agg, axis=0, keepdims=True) * inv_n
        diff = agg - mean
        var = jnp.sum(jnp.where(row_mask, diff * diff, 0.0),
                      axis=0, keepdims=True) * inv_n
        out = (diff * jax.lax.rsqrt(var + eps)
               * gamma_ref[layer] + beta_ref[layer])
        if layer != num_layer - 1:
            out = jnp.maximum(out, 0.0)
        h = out

    hnode_ref[...] = h                                         # lane-dense store

    # --- graph pooling -------------------------------------------------------
    # global_mean_pool: normalized one-hot matmul on the MXU.
    gmean_ref[...] = jnp.dot(pmean_ref[...], h,
                             preferred_element_type=jnp.float32)
    # global_max_pool: per-graph masked max (static unrolled loop over graphs;
    # padded node rows / padded graphs are excluded by the mask / zero-filled).
    pmaskt = pmaskt_ref[...]                                   # (n_pad, g_pad)
    rows = []
    for g in range(num_graphs):
        mask_col = pmaskt[:, g:g + 1] > 0.0                    # (n_pad, 1)
        masked = jnp.where(mask_col, h, -jnp.inf)
        rows.append(jnp.max(masked, axis=0, keepdims=True))
    for _ in range(g_pad - num_graphs):
        rows.append(jnp.zeros((1, f_pad), jnp.float32))
    gmax_ref[...] = jnp.concatenate(rows, axis=0)


# ------------------------------ JAX glue ------------------------------------

def build_norm_adjacency(edge_index, num_nodes):
    """Dense normalized adjacency with self loops (plain-JAX scatter glue).

    Matches GCNConv: add_self_loops, deg = degree(row) + 1,
    norm_e = deg^-0.5[row_e] * deg^-0.5[col_e], messages x[row] aggregated at col.
    """
    row, col = edge_index[0], edge_index[1]
    self_idx = jnp.arange(num_nodes, dtype=edge_index.dtype)
    row = jnp.concatenate([row, self_idx])
    col = jnp.concatenate([col, self_idx])
    deg = jnp.zeros((num_nodes,), jnp.float32).at[row].add(1.0) + 1.0
    deg_inv_sqrt = deg ** -0.5
    deg_inv_sqrt = jnp.where(jnp.isinf(deg_inv_sqrt), 0.0, deg_inv_sqrt)
    norm = deg_inv_sqrt[row] * deg_inv_sqrt[col]
    a = jnp.zeros((num_nodes, num_nodes), jnp.float32).at[col, row].add(norm)
    return a


def init_params(key, num_layer, input_dim, emb_dim):
    """Deterministic synthetic parameters (module shapes from __init__)."""
    keys = jax.random.split(key, 2 + 2 * num_layer)
    params = {
        "enc_w": jax.random.normal(keys[0], (2, input_dim), jnp.float32) * 0.1,
        "enc_b": jax.random.normal(keys[1], (1, input_dim), jnp.float32) * 0.1,
        "layers": [],
    }
    in_dim = input_dim
    for layer in range(num_layer):
        wk, bk = keys[2 + 2 * layer], keys[3 + 2 * layer]
        params["layers"].append({
            "w": jax.random.normal(wk, (in_dim, emb_dim), jnp.float32) * 0.1,
            "b": jax.random.normal(bk, (1, emb_dim), jnp.float32) * 0.1,
            "gamma": jnp.ones((1, emb_dim), jnp.float32),   # BatchNorm weight
            "beta": jnp.zeros((1, emb_dim), jnp.float32),   # BatchNorm bias
        })
        in_dim = emb_dim
    return params


def gnn_forward(params, node_types, num_inverted_predecessors, edge_index,
                batch, num_graphs):
    """Returns (h_graph, h_node): h_graph is concat([mean_pool, max_pool])."""
    emb_dim = params["layers"][-1]["w"].shape[1]
    input_dim = params["enc_w"].shape[1]
    n = node_types.shape[0]

    n_pad = _round_up(n, 8)
    f_pad = _round_up(max(input_dim, emb_dim), 128)   # lane-dense feature dim
    g_pad = _round_up(num_graphs, 8)
    num_layer = len(params["layers"])

    def pad2(m, r, c):
        m = m.astype(jnp.float32)
        return jnp.pad(m, ((0, r - m.shape[0]), (0, c - m.shape[1])))

    # Node inputs (encoder operands), zero row-padded.
    x0 = pad2(node_types.reshape(-1, 1), n_pad, 1)
    x1 = pad2(num_inverted_predecessors.reshape(-1, 1), n_pad, 1)

    # Encoder params, lane-padded (padded columns stay exactly zero).
    wenc = pad2(params["enc_w"], 2, f_pad)
    benc = pad2(params["enc_b"], 1, f_pad)

    # Dense normalized adjacency, zero-padded.
    a = pad2(build_norm_adjacency(edge_index, n), n_pad, n_pad)

    # Per-layer params stacked into single pallas_call inputs.
    w_all = jnp.stack([pad2(lp["w"], f_pad, f_pad) for lp in params["layers"]])
    b_all = jnp.stack([pad2(lp["b"], 1, f_pad) for lp in params["layers"]])
    gamma_all = jnp.stack([pad2(lp["gamma"], 1, f_pad) for lp in params["layers"]])
    beta_all = jnp.stack([pad2(lp["beta"], 1, f_pad) for lp in params["layers"]])

    # Pooling operands: normalized one-hot (mean) and transposed 0/1 mask (max).
    onehot = (batch[None, :] ==
              jnp.arange(num_graphs, dtype=batch.dtype)[:, None]
              ).astype(jnp.float32)                                  # (G, N)
    counts = jnp.maximum(jnp.sum(onehot, axis=1, keepdims=True), 1.0)
    p_mean = pad2(onehot / counts, g_pad, n_pad)
    p_maskt = pad2(onehot.T, n_pad, g_pad)

    layer_dims = tuple((lp["w"].shape[0], lp["w"].shape[1])
                       for lp in params["layers"])

    kernel = functools.partial(
        _fused_gnn_kernel,
        layer_dims=layer_dims, n_real=n, num_graphs=num_graphs)

    hnode_p, gmean_p, gmax_p = pl.pallas_call(
        kernel,
        out_shape=(
            jax.ShapeDtypeStruct((n_pad, f_pad), jnp.float32),
            jax.ShapeDtypeStruct((g_pad, f_pad), jnp.float32),
            jax.ShapeDtypeStruct((g_pad, f_pad), jnp.float32),
        ),
        in_specs=[
            _full_spec((n_pad, 1)),                  # x0 (node_types)
            _full_spec((n_pad, 1)),                  # x1 (num_inverted_preds)
            _full_spec((2, f_pad)),                  # encoder W
            _full_spec((1, f_pad)),                  # encoder b
            _full_spec((n_pad, n_pad)),              # normalized adjacency
            _full_spec((num_layer, f_pad, f_pad)),   # stacked layer W
            _full_spec((num_layer, 1, f_pad)),       # stacked layer b
            _full_spec((num_layer, 1, f_pad)),       # stacked BN gamma
            _full_spec((num_layer, 1, f_pad)),       # stacked BN beta
            _full_spec((g_pad, n_pad)),              # mean-pool matrix
            _full_spec((n_pad, g_pad)),              # max-pool mask (transposed)
        ],
        out_specs=(
            _full_spec((n_pad, f_pad)),
            _full_spec((g_pad, f_pad)),
            _full_spec((g_pad, f_pad)),
        ),
    )(x0, x1, wenc, benc, a, w_all, b_all, gamma_all, beta_all, p_mean, p_maskt)

    h_node = hnode_p[:n, :emb_dim]
    h_graph = jnp.concatenate(
        [gmean_p[:num_graphs, :emb_dim], gmax_p[:num_graphs, :emb_dim]], axis=1)
    return h_graph, h_node


# --------------------------------- main -------------------------------------

if __name__ == "__main__":
    key = jax.random.PRNGKey(0)
    k_params, k_nt, k_np = jax.random.split(key, 3)

    NUM_GRAPHS = 2
    NODES_PER_GRAPH = 8
    N = NUM_GRAPHS * NODES_PER_GRAPH     # 16 graph nodes total
    INPUT_DIM = 8                        # node_encoder output dim
    EMB_DIM = 32                         # GNN embedding dim
    NUM_LAYER = 2

    params = init_params(k_params, NUM_LAYER, INPUT_DIM, EMB_DIM)

    # Deterministic small batch: two disjoint bidirectional rings.
    srcs, dsts = [], []
    for g in range(NUM_GRAPHS):
        base = g * NODES_PER_GRAPH
        s = base + jnp.arange(NODES_PER_GRAPH, dtype=jnp.int32)
        d = base + jnp.roll(jnp.arange(NODES_PER_GRAPH, dtype=jnp.int32), -1)
        srcs += [s, d]
        dsts += [d, s]
    edge_index = jnp.stack(
        [jnp.concatenate(srcs), jnp.concatenate(dsts)], axis=0)   # (2, 32)

    batch = jnp.repeat(jnp.arange(NUM_GRAPHS, dtype=jnp.int32), NODES_PER_GRAPH)

    node_types = jax.random.randint(k_nt, (N,), 0, 4).astype(jnp.float32)
    num_inverted_predecessors = jax.random.randint(k_np, (N,), 0, 3).astype(
        jnp.float32)

    h_graph, h_node = gnn_forward(
        params, node_types, num_inverted_predecessors, edge_index, batch,
        NUM_GRAPHS)
    h_graph = jax.block_until_ready(h_graph)
    h_node = jax.block_until_ready(h_node)
    assert h_graph.shape == (NUM_GRAPHS, 2 * EMB_DIM)
    assert h_node.shape == (N, EMB_DIM)
    print("KERNEL_OK")
</pallas_src>

<mosaic_0001>
module attributes {stable_mosaic.version = 11 : i64} {
  func.func @_fused_gnn_kernel(%arg0: memref<16x1xf32, #tpu.memory_space<vmem>>, %arg1: memref<16x1xf32, #tpu.memory_space<vmem>>, %arg2: memref<2x128xf32, #tpu.memory_space<vmem>>, %arg3: memref<1x128xf32, #tpu.memory_space<vmem>>, %arg4: memref<16x16xf32, #tpu.memory_space<vmem>>, %arg5: memref<2x128x128xf32, #tpu.memory_space<vmem>>, %arg6: memref<2x1x128xf32, #tpu.memory_space<vmem>>, %arg7: memref<2x1x128xf32, #tpu.memory_space<vmem>>, %arg8: memref<2x1x128xf32, #tpu.memory_space<vmem>>, %arg9: memref<8x16xf32, #tpu.memory_space<vmem>>, %arg10: memref<16x8xf32, #tpu.memory_space<vmem>>, %arg11: memref<16x128xf32, #tpu.memory_space<vmem>>, %arg12: memref<8x128xf32, #tpu.memory_space<vmem>>, %arg13: memref<8x128xf32, #tpu.memory_space<vmem>>) attributes {dimension_semantics = [], scalar_prefetch = 0 : i64, scratch_operands = 0 : i64, tpu.core_type = #tpu.core_type<tc>} {
    %c0 = arith.constant 0 : index
    %c0_0 = arith.constant 0 : index
    %0 = vector.load %arg2[%c0, %c0_0] : memref<2x128xf32, #tpu.memory_space<vmem>>, vector<2x128xf32>
    %c0_1 = arith.constant 0 : index
    %c0_2 = arith.constant 0 : index
    %1 = vector.load %arg0[%c0_1, %c0_2] : memref<16x1xf32, #tpu.memory_space<vmem>>, vector<16x1xf32>
    %2 = vector.extract_strided_slice %0 {offsets = [0, 0], sizes = [1, 128], strides = [1, 1]} : vector<2x128xf32> to vector<1x128xf32>
    %3 = vector.broadcast %1 : vector<16x1xf32> to vector<16x128xf32>
    %4 = vector.broadcast %2 : vector<1x128xf32> to vector<16x128xf32>
    %5 = arith.mulf %3, %4 : vector<16x128xf32>
    %c0_3 = arith.constant 0 : index
    %c0_4 = arith.constant 0 : index
    %6 = vector.load %arg1[%c0_3, %c0_4] : memref<16x1xf32, #tpu.memory_space<vmem>>, vector<16x1xf32>
    %7 = vector.extract_strided_slice %0 {offsets = [1, 0], sizes = [1, 128], strides = [1, 1]} : vector<2x128xf32> to vector<1x128xf32>
    %8 = vector.broadcast %6 : vector<16x1xf32> to vector<16x128xf32>
    %9 = vector.broadcast %7 : vector<1x128xf32> to vector<16x128xf32>
    %10 = arith.mulf %8, %9 : vector<16x128xf32>
    %11 = arith.addf %5, %10 : vector<16x128xf32>
    %c0_5 = arith.constant 0 : index
    %c0_6 = arith.constant 0 : index
    %12 = vector.load %arg3[%c0_5, %c0_6] : memref<1x128xf32, #tpu.memory_space<vmem>>, vector<1x128xf32>
    %13 = vector.broadcast %12 : vector<1x128xf32> to vector<16x128xf32>
    %14 = arith.addf %11, %13 : vector<16x128xf32>
    %c0_7 = arith.constant 0 : index
    %c0_8 = arith.constant 0 : index
    %15 = vector.load %arg4[%c0_7, %c0_8] : memref<16x16xf32, #tpu.memory_space<vmem>>, vector<16x16xf32>
    %cst = arith.constant dense<0.000000e+00> : vector<16xf32>
    %16 = vector.multi_reduction <add>, %15, %cst [1] : vector<16x16xf32> to vector<16xf32>
    %17 = vector.shape_cast %16 : vector<16xf32> to vector<16x1xf32>
    %18 = tpu.iota {dimensions = array<i32: 0>} : vector<16x1xi32>
    %c16_i32 = arith.constant 16 : i32
    %19 = vector.broadcast %c16_i32 : i32 to vector<16x1xi32>
    %20 = arith.cmpi slt, %18, %19 : vector<16x1xi32>
    %c0_9 = arith.constant 0 : index
    %c0_10 = arith.constant 0 : index
    %c0_11 = arith.constant 0 : index
    %21 = vector.load %arg5[%c0_9, %c0_10, %c0_11] : memref<2x128x128xf32, #tpu.memory_space<vmem>>, vector<1x128x128xf32>
    %22 = vector.shape_cast %21 : vector<1x128x128xf32> to vector<128x128xf32>
    %c0_12 = arith.constant 0 : index
    %c0_13 = arith.constant 0 : index
    %c0_14 = arith.constant 0 : index
    %23 = vector.load %arg6[%c0_12, %c0_13, %c0_14] : memref<2x1x128xf32, #tpu.memory_space<vmem>>, vector<1x1x128xf32>
    %24 = vector.shape_cast %23 : vector<1x1x128xf32> to vector<1x128xf32>
    %cst_15 = arith.constant dense<0.000000e+00> : vector<16x128xf32>
    %25 = tpu.matmul %15, %14, %cst_15 {dimension_numbers = #tpu.dot_dimension_numbers<[1], [0], [0], [1], [0, 0, 1, 1], [], []>} : vector<16x16xf32>, vector<16x128xf32>, vector<16x128xf32> -> vector<16x128xf32>
    %cst_16 = arith.constant dense<0.000000e+00> : vector<16x128xf32>
    %26 = tpu.matmul %25, %22, %cst_16 {dimension_numbers = #tpu.dot_dimension_numbers<[1], [0], [0], [1], [0, 0, 1, 1], [], []>} : vector<16x128xf32>, vector<128x128xf32>, vector<16x128xf32> -> vector<16x128xf32>
    %27 = vector.broadcast %17 : vector<16x1xf32> to vector<16x128xf32>
    %28 = vector.broadcast %24 : vector<1x128xf32> to vector<16x128xf32>
    %29 = arith.mulf %27, %28 : vector<16x128xf32>
    %30 = arith.addf %26, %29 : vector<16x128xf32>
    %cst_17 = arith.constant dense<0.000000e+00> : vector<128xf32>
    %31 = vector.multi_reduction <add>, %30, %cst_17 [0] : vector<16x128xf32> to vector<128xf32>
    %32 = vector.shape_cast %31 : vector<128xf32> to vector<1x128xf32>
    %cst_18 = arith.constant 6.250000e-02 : f32
    %33 = vector.broadcast %cst_18 : f32 to vector<1x128xf32>
    %34 = arith.mulf %32, %33 : vector<1x128xf32>
    %35 = vector.broadcast %34 : vector<1x128xf32> to vector<16x128xf32>
    %36 = arith.subf %30, %35 : vector<16x128xf32>
    %37 = arith.mulf %36, %36 : vector<16x128xf32>
    %cst_19 = arith.constant 0.000000e+00 : f32
    %38 = vector.shape_cast %20 : vector<16x1xi1> to vector<16x1xi1>
    %39 = vector.broadcast %38 : vector<16x1xi1> to vector<16x128xi1>
    %40 = vector.broadcast %cst_19 : f32 to vector<16x128xf32>
    %41 = arith.select %39, %37, %40 : vector<16x128xi1>, vector<16x128xf32>
    %cst_20 = arith.constant dense<0.000000e+00> : vector<128xf32>
    %42 = vector.multi_reduction <add>, %41, %cst_20 [0] : vector<16x128xf32> to vector<128xf32>
    %43 = vector.shape_cast %42 : vector<128xf32> to vector<1x128xf32>
    %cst_21 = arith.constant 6.250000e-02 : f32
    %44 = vector.broadcast %cst_21 : f32 to vector<1x128xf32>
    %45 = arith.mulf %43, %44 : vector<1x128xf32>
    %cst_22 = arith.constant 9.99999974E-6 : f32
    %46 = vector.broadcast %cst_22 : f32 to vector<1x128xf32>
    %47 = arith.addf %45, %46 : vector<1x128xf32>
    %48 = math.rsqrt %47 : vector<1x128xf32>
    %49 = vector.broadcast %48 : vector<1x128xf32> to vector<16x128xf32>
    %50 = arith.mulf %36, %49 : vector<16x128xf32>
    %c0_23 = arith.constant 0 : index
    %c0_24 = arith.constant 0 : index
    %c0_25 = arith.constant 0 : index
    %51 = vector.load %arg7[%c0_23, %c0_24, %c0_25] : memref<2x1x128xf32, #tpu.memory_space<vmem>>, vector<1x1x128xf32>
    %52 = vector.shape_cast %51 : vector<1x1x128xf32> to vector<1x128xf32>
    %53 = vector.broadcast %52 : vector<1x128xf32> to vector<16x128xf32>
    %54 = arith.mulf %50, %53 : vector<16x128xf32>
    %c0_26 = arith.constant 0 : index
    %c0_27 = arith.constant 0 : index
    %c0_28 = arith.constant 0 : index
    %55 = vector.load %arg8[%c0_26, %c0_27, %c0_28] : memref<2x1x128xf32, #tpu.memory_space<vmem>>, vector<1x1x128xf32>
    %56 = vector.shape_cast %55 : vector<1x1x128xf32> to vector<1x128xf32>
    %57 = vector.broadcast %56 : vector<1x128xf32> to vector<16x128xf32>
    %58 = arith.addf %54, %57 : vector<16x128xf32>
    %cst_29 = arith.constant 0.000000e+00 : f32
    %59 = vector.broadcast %cst_29 : f32 to vector<16x128xf32>
    %60 = arith.maximumf %58, %59 : vector<16x128xf32>
    %c1 = arith.constant 1 : index
    %c0_30 = arith.constant 0 : index
    %c0_31 = arith.constant 0 : index
    %61 = vector.load %arg5[%c1, %c0_30, %c0_31] : memref<2x128x128xf32, #tpu.memory_space<vmem>>, vector<1x128x128xf32>
    %62 = vector.shape_cast %61 : vector<1x128x128xf32> to vector<128x128xf32>
    %c1_32 = arith.constant 1 : index
    %c0_33 = arith.constant 0 : index
    %c0_34 = arith.constant 0 : index
    %63 = vector.load %arg6[%c1_32, %c0_33, %c0_34] : memref<2x1x128xf32, #tpu.memory_space<vmem>>, vector<1x1x128xf32>
    %64 = vector.shape_cast %63 : vector<1x1x128xf32> to vector<1x128xf32>
    %cst_35 = arith.constant dense<0.000000e+00> : vector<16x128xf32>
    %65 = tpu.matmul %60, %62, %cst_35 {dimension_numbers = #tpu.dot_dimension_numbers<[1], [0], [0], [1], [0, 0, 1, 1], [], []>} : vector<16x128xf32>, vector<128x128xf32>, vector<16x128xf32> -> vector<16x128xf32>
    %66 = vector.broadcast %64 : vector<1x128xf32> to vector<16x128xf32>
    %67 = arith.addf %65, %66 : vector<16x128xf32>
    %cst_36 = arith.constant dense<0.000000e+00> : vector<16x128xf32>
    %68 = tpu.matmul %15, %67, %cst_36 {dimension_numbers = #tpu.dot_dimension_numbers<[1], [0], [0], [1], [0, 0, 1, 1], [], []>} : vector<16x16xf32>, vector<16x128xf32>, vector<16x128xf32> -> vector<16x128xf32>
    %cst_37 = arith.constant dense<0.000000e+00> : vector<128xf32>
    %69 = vector.multi_reduction <add>, %68, %cst_37 [0] : vector<16x128xf32> to vector<128xf32>
    %70 = vector.shape_cast %69 : vector<128xf32> to vector<1x128xf32>
    %cst_38 = arith.constant 6.250000e-02 : f32
    %71 = vector.broadcast %cst_38 : f32 to vector<1x128xf32>
    %72 = arith.mulf %70, %71 : vector<1x128xf32>
    %73 = vector.broadcast %72 : vector<1x128xf32> to vector<16x128xf32>
    %74 = arith.subf %68, %73 : vector<16x128xf32>
    %75 = arith.mulf %74, %74 : vector<16x128xf32>
    %cst_39 = arith.constant 0.000000e+00 : f32
    %76 = vector.shape_cast %20 : vector<16x1xi1> to vector<16x1xi1>
    %77 = vector.broadcast %76 : vector<16x1xi1> to vector<16x128xi1>
    %78 = vector.broadcast %cst_39 : f32 to vector<16x128xf32>
    %79 = arith.select %77, %75, %78 : vector<16x128xi1>, vector<16x128xf32>
    %cst_40 = arith.constant dense<0.000000e+00> : vector<128xf32>
    %80 = vector.multi_reduction <add>, %79, %cst_40 [0] : vector<16x128xf32> to vector<128xf32>
    %81 = vector.shape_cast %80 : vector<128xf32> to vector<1x128xf32>
    %cst_41 = arith.constant 6.250000e-02 : f32
    %82 = vector.broadcast %cst_41 : f32 to vector<1x128xf32>
    %83 = arith.mulf %81, %82 : vector<1x128xf32>
    %cst_42 = arith.constant 9.99999974E-6 : f32
    %84 = vector.broadcast %cst_42 : f32 to vector<1x128xf32>
    %85 = arith.addf %83, %84 : vector<1x128xf32>
    %86 = math.rsqrt %85 : vector<1x128xf32>
    %87 = vector.broadcast %86 : vector<1x128xf32> to vector<16x128xf32>
    %88 = arith.mulf %74, %87 : vector<16x128xf32>
    %c1_43 = arith.constant 1 : index
    %c0_44 = arith.constant 0 : index
    %c0_45 = arith.constant 0 : index
    %89 = vector.load %arg7[%c1_43, %c0_44, %c0_45] : memref<2x1x128xf32, #tpu.memory_space<vmem>>, vector<1x1x128xf32>
    %90 = vector.shape_cast %89 : vector<1x1x128xf32> to vector<1x128xf32>
    %91 = vector.broadcast %90 : vector<1x128xf32> to vector<16x128xf32>
    %92 = arith.mulf %88, %91 : vector<16x128xf32>
    %c1_46 = arith.constant 1 : index
    %c0_47 = arith.constant 0 : index
    %c0_48 = arith.constant 0 : index
    %93 = vector.load %arg8[%c1_46, %c0_47, %c0_48] : memref<2x1x128xf32, #tpu.memory_space<vmem>>, vector<1x1x128xf32>
    %94 = vector.shape_cast %93 : vector<1x1x128xf32> to vector<1x128xf32>
    %95 = vector.broadcast %94 : vector<1x128xf32> to vector<16x128xf32>
    %96 = arith.addf %92, %95 : vector<16x128xf32>
    %c0_49 = arith.constant 0 : index
    %c0_50 = arith.constant 0 : index
    %97 = vector.load %arg11[%c0_49, %c0_50] : memref<16x128xf32, #tpu.memory_space<vmem>>, vector<16x128xf32>
    tpu.vector_store %arg11[%c0_49, %c0_50], %96 {strides = array<i32>} : memref<16x128xf32, #tpu.memory_space<vmem>>, vector<16x128xf32>,
    %c0_51 = arith.constant 0 : index
    %c0_52 = arith.constant 0 : index
    %98 = vector.load %arg9[%c0_51, %c0_52] : memref<8x16xf32, #tpu.memory_space<vmem>>, vector<8x16xf32>
    %cst_53 = arith.constant dense<0.000000e+00> : vector<8x128xf32>
    %99 = tpu.matmul %98, %96, %cst_53 {dimension_numbers = #tpu.dot_dimension_numbers<[1], [0], [0], [1], [0, 0, 1, 1], [], []>} : vector<8x16xf32>, vector<16x128xf32>, vector<8x128xf32> -> vector<8x128xf32>
    %c0_54 = arith.constant 0 : index
    %c0_55 = arith.constant 0 : index
    %100 = vector.load %arg12[%c0_54, %c0_55] : memref<8x128xf32, #tpu.memory_space<vmem>>, vector<8x128xf32>
    tpu.vector_store %arg12[%c0_54, %c0_55], %99 {strides = array<i32>} : memref<8x128xf32, #tpu.memory_space<vmem>>, vector<8x128xf32>,
    %c0_56 = arith.constant 0 : index
    %c0_57 = arith.constant 0 : index
    %101 = vector.load %arg10[%c0_56, %c0_57] : memref<16x8xf32, #tpu.memory_space<vmem>>, vector<16x8xf32>
    %102 = vector.extract_strided_slice %101 {offsets = [0, 0], sizes = [16, 1], strides = [1, 1]} : vector<16x8xf32> to vector<16x1xf32>
    %cst_58 = arith.constant 0.000000e+00 : f32
    %103 = vector.broadcast %cst_58 : f32 to vector<16x1xf32>
    %104 = arith.cmpf ogt, %102, %103 : vector<16x1xf32>
    %cst_59 = arith.constant 0xFF800000 : f32
    %105 = vector.shape_cast %104 : vector<16x1xi1> to vector<16x1xi1>
    %106 = vector.broadcast %105 : vector<16x1xi1> to vector<16x128xi1>
    %107 = vector.broadcast %cst_59 : f32 to vector<16x128xf32>
    %108 = arith.select %106, %96, %107 : vector<16x128xi1>, vector<16x128xf32>
    %cst_60 = arith.constant dense<0xFF800000> : vector<128xf32>
    %109 = vector.multi_reduction <maximumf>, %108, %cst_60 [0] : vector<16x128xf32> to vector<128xf32>
    %110 = vector.shape_cast %109 : vector<128xf32> to vector<1x128xf32>
    %111 = vector.extract_strided_slice %101 {offsets = [0, 1], sizes = [16, 1], strides = [1, 1]} : vector<16x8xf32> to vector<16x1xf32>
    %cst_61 = arith.constant 0.000000e+00 : f32
    %112 = vector.broadcast %cst_61 : f32 to vector<16x1xf32>
    %113 = arith.cmpf ogt, %111, %112 : vector<16x1xf32>
    %cst_62 = arith.constant 0xFF800000 : f32
    %114 = vector.shape_cast %113 : vector<16x1xi1> to vector<16x1xi1>
    %115 = vector.broadcast %114 : vector<16x1xi1> to vector<16x128xi1>
    %116 = vector.broadcast %cst_62 : f32 to vector<16x128xf32>
    %117 = arith.select %115, %96, %116 : vector<16x128xi1>, vector<16x128xf32>
    %cst_63 = arith.constant dense<0xFF800000> : vector<128xf32>
    %118 = vector.multi_reduction <maximumf>, %117, %cst_63 [0] : vector<16x128xf32> to vector<128xf32>
    %119 = vector.shape_cast %118 : vector<128xf32> to vector<1x128xf32>
    %cst_64 = arith.constant 0.000000e+00 : f32
    %120 = vector.broadcast %cst_64 : f32 to vector<1x128xf32>
    %cst_65 = arith.constant 0.000000e+00 : f32
    %121 = vector.broadcast %cst_65 : f32 to vector<1x128xf32>
    %cst_66 = arith.constant 0.000000e+00 : f32
    %122 = vector.broadcast %cst_66 : f32 to vector<1x128xf32>
    %cst_67 = arith.constant 0.000000e+00 : f32
    %123 = vector.broadcast %cst_67 : f32 to vector<1x128xf32>
    %cst_68 = arith.constant 0.000000e+00 : f32
    %124 = vector.broadcast %cst_68 : f32 to vector<1x128xf32>
    %cst_69 = arith.constant 0.000000e+00 : f32
    %125 = vector.broadcast %cst_69 : f32 to vector<1x128xf32>
    %126 = tpu.concatenate %110, %119, %120, %121, %122, %123, %124, %125 in 0 : vector<1x128xf32>, vector<1x128xf32>, vector<1x128xf32>, vector<1x128xf32>, vector<1x128xf32>, vector<1x128xf32>, vector<1x128xf32>, vector<1x128xf32> -> vector<8x128xf32>
    %c0_70 = arith.constant 0 : index
    %c0_71 = arith.constant 0 : index
    %127 = vector.load %arg13[%c0_70, %c0_71] : memref<8x128xf32, #tpu.memory_space<vmem>>, vector<8x128xf32>
    tpu.vector_store %arg13[%c0_70, %c0_71], %126 {strides = array<i32>} : memref<8x128xf32, #tpu.memory_space<vmem>>, vector<8x128xf32>,
    return
  }
}

</mosaic_0001>

<bundles_post_ra>
// kernel: tpu_custom_call.1
= control target key start
LH: loop header
LB: loop body
LE: loop exit
PB: predicated region body
PF: predicated region fallthrough
CT: control target
= control target key end

     0   :  { %19 = vsyncpa [#allocation3], 0  ;;  %s1299_s0 = inlined_call_operand.vmem [shape: f32[16,1], index: 0, kind: input, shape index: {}]   ;;  %s1300_s1 = inlined_call_operand.vmem [shape: f32[16,1], index: 1, kind: input, shape index: {}]   ;;  %s1301_s2 = inlined_call_operand.vmem [shape: f32[2,128], index: 2, kind: input, shape index: {}]   ;;  %s1302_s3 = inlined_call_operand.vmem [shape: f32[1,128], index: 3, kind: input, shape index: {}]   ;;  %s1303_s4 = inlined_call_operand.vmem [shape: f32[16,16], index: 4, kind: input, shape index: {}]   ;;  %s1304_s5 = inlined_call_operand.hbm [shape: f32[2,128,128], index: 5, kind: input, shape index: {}]   ;;  %s1305_s6 = inlined_call_operand.vmem [shape: f32[2,1,128], index: 6, kind: input, shape index: {}]   ;;  %s1306_s7 = inlined_call_operand.vmem [shape: f32[2,1,128], index: 7, kind: input, shape index: {}]   ;;  %s1307_s8 = inlined_call_operand.vmem [shape: f32[2,1,128], index: 8, kind: input, shape index: {}]   ;;  %s1308_s9 = inlined_call_operand.vmem [shape: f32[8,16], index: 9, kind: input, shape index: {}]   ;;  %s1309_s10 = inlined_call_operand.vmem [shape: f32[16,8], index: 10, kind: input, shape index: {}]   ;;  %s1310_s11 = inlined_call_operand.hbm [shape: f32[16,128], index: 11, kind: output, shape index: {0}]   ;;  %s1311_s12 = inlined_call_operand.hbm [shape: f32[8,128], index: 12, kind: output, shape index: {1}]   ;;  %s1312_s13 = inlined_call_operand.hbm [shape: f32[8,128], index: 13, kind: output, shape index: {2}]  }
   0x1   :  { %20 = vsyncpa [#allocation4], 0 }
   0x2   :  { %21 = vsyncpa [#allocation7], 0  ;;  %s1088_s25 = smov [#allocation2]   ;;  %s994_s29 = scalar_lea.hbm %s1304_s5, 4096 }
   0x3   :  { %s37_s26 = sshll.u32 %s1088_s25, 4  ;;  %p995_p0 = scmp.ne.s32.totalorder %s1304_s5, %s994_s29  ;;  %s38_s26 = int_to_ptr.vmem [resolvable:$true] %s37_s26 }
   0x4   :  { %p998_p1 = scmp.lt.u32.totalorder %s994_s29, %s1304_s5 }
   0x6   :  { %p1000_p2 = pnand %p998_p1, %p995_p0 }
   0x8   :  { %1003 = shalt.err (!%p1000_p2)
}
   0x9   :  { %s1004_s17 = scalar_lea.vmem %s38_s26, 4096  ;;  %p1009_p4 = scmp.lt.s32.totalorder %s38_s26, %s38_s26 }
   0xa   :  { %p1005_p3 = scmp.ne.s32.totalorder %s38_s26, %s1004_s17  ;;  %p1010_p5 = scmp.lt.s32.totalorder %s1004_s17, %s1004_s17 }
   0xc   :  { %p1011_p6 = por %p1010_p5, %p1009_p4 }
   0xe   :  { %p1012_p7 = pnand %p1011_p6, %p1005_p3 }
  0x10   :  { %1015 = shalt.err (!%p1012_p7)
}
  0x11   :  { %s1089_s18 = smov 128   ;;  %s1090_s19 = smov 8  }
  0x12   :  { %43 = dma.hbm_to_vmem [thread:$0]  %s1304_s5, 4096, %s38_s26, [#allocation3], %s1089_s18, %s1089_s18, %s1090_s19  }
  0x13   :  { %1082 = dma.done.wait [#allocation3], 4096  }
  0x14   :  { %1083 = vsyncadd [#allocation3], 4294963200  ;;  %v1091_v0 = vmov 0   ;;  %v76_v1 = vld [vmem:[%s1300_s1] sm:$0xff]  ;;  %vm107_vm0 = vcmask 130048   ;;  %v77_v4 = vld [vmem:[%s1300_s1 + $0x8] sm:$0xff]  ;;  %v70_v37 = vlaneseq }
  0x15   :  { %987 = vset.pattern.permute.xlu1 %v1091_v0  ;;  %986 = vset.pattern.permute.xlu0 %v1091_v0  ;;  %v58_v2 = vld [vmem:[%s1299_s0] sm:$0xff]  ;;  %v59_v5 = vld [vmem:[%s1299_s0 + $0x8] sm:$0xff]  ;;  %v121_v15 = vld [vmem:[#allocation2 + $0x10] sm:$0xff]  ;;  %vm1094_vm3 = vmmov 0   ;;  %vm688_vm8 = vcmask 1040384   ;;  %vm690_vm9 = vcmask 1041408  }
  0x16   :  { %80 = vperm.xlu1 %987, %v76_v1   ;;  %62 = vperm.xlu0 %986, %v58_v2   ;;  %v1193_v3 = vld [vmem:[%s1303_s4] sm:$0xff]  ;;  %v1208_v7 = vld [vmem:[%s1303_s4 + $0x8] sm:$0xff]  ;;  %v122_v17 = vld [vmem:[#allocation2 + $0x18] sm:$0xff]  ;;  %v71_v38 = vshrl.u32 %v70_v37, 7  ;;  %vm692_vm10 = vcmask 1042432   ;;  %vm694_vm11 = vcmask 1043456  }
  0x17   :  { %813 = vmatprep.mubr.msk.f32.mxu0 %vm107_vm0, %v1193_v3  ;;  %v108_v6 = vsel %vm107_vm0, %v1193_v3, 0.0  ;;  %v111_v8 = vsel %vm107_vm0, %v1208_v7, 0.0  ;;  %v649_v9 = vld [vmem:[%s1309_s10 + $0x8] sm:$0xff]  ;;  %v648_v10 = vld [vmem:[%s1309_s10] sm:$0xff]  ;;  %v908_v18 = vpack.c.bf16 %v122_v17, %v121_v15  ;;  %v125_v22 = vld [vmem:[#allocation2 + $0x30] sm:$0xff]  ;;  %vm696_vm12 = vcmask 1044480  }
  0x18   :  { %vm651_vm1 = vcmp.gt.f32.partialorder %v649_v9, 0.0  ;;  %vm650_vm2 = vcmp.gt.f32.partialorder %v648_v10, 0.0  ;;  %v119_v13 = vld [vmem:[#allocation2] sm:$0xff]  ;;  %v120_v14 = vld [vmem:[#allocation2 + $0x8] sm:$0xff]  ;;  %v126_v23 = vld [vmem:[#allocation2 + $0x38] sm:$0xff]  ;;  %v90_v39 = vsub.s32 1, %v71_v38 }
  0x19   :  { %v1218_v11 = vsel %vm651_vm1, 1, %v1091_v0  ;;  %v1220_v12 = vsel %vm650_vm2, 1, %v1091_v0  ;;  %v904_v16 = vpack.c.bf16 %v120_v14, %v119_v13  ;;  %v123_v19 = vld [vmem:[#allocation2 + $0x20] sm:$0xff]  ;;  %v124_v20 = vld [vmem:[#allocation2 + $0x28] sm:$0xff]  ;;  %v916_v24 = vpack.c.bf16 %v126_v23, %v125_v22  ;;  %v129_v28 = vld [vmem:[#allocation2 + $0x50] sm:$0xff] }
  0x1a   :  { %85 = vperm.xlu1 %987, %v77_v4   ;;  %67 = vperm.xlu0 %986, %v59_v5   ;;  %v912_v21 = vpack.c.bf16 %v124_v20, %v123_v19  ;;  %v127_v25 = vld [vmem:[#allocation2 + $0x40] sm:$0xff]  ;;  %v128_v26 = vld [vmem:[#allocation2 + $0x48] sm:$0xff]  ;;  %v130_v29 = vld [vmem:[#allocation2 + $0x58] sm:$0xff]  ;;  %v72_v40 = vsub.s32 0, %v71_v38  ;;  %vm698_vm13 = vcmask 1045504   ;;  %vm700_vm14 = vcmask 1046528  }
  0x1b   :  { %905 = vmatprep.subr.bf16.mxu1 %v904_v16  ;;  %v920_v27 = vpack.c.bf16 %v128_v26, %v127_v25  ;;  %v924_v30 = vpack.c.bf16 %v130_v29, %v129_v28  ;;  %v131_v31 = vld [vmem:[#allocation2 + $0x60] sm:$0xff]  ;;  %v132_v32 = vld [vmem:[#allocation2 + $0x68] sm:$0xff]  ;;  %v133_v34 = vld [vmem:[#allocation2 + $0x70] sm:$0xff] }
  0x1c   :  { %907 = vmatpush3.bf16.msra.mxu1 %v904_v16  ;;  %v928_v33 = vpack.c.bf16 %v132_v32, %v131_v31  ;;  %v134_v35 = vld [vmem:[#allocation2 + $0x78] sm:$0xff]  ;;  %v57_v41 = vld [vmem:[%s1301_s2] sm:$0x3]  ;;  %v352_v61 = vld [vmem:[#allocation2 + $0x88] sm:$0xff] }
  0x1d   :  { %909 = vmatprep.subr.bf16.mxu1 %v908_v18  ;;  %v932_v36 = vpack.c.bf16 %v134_v35, %v133_v34  ;;  %v91_v42 = vrot.slane %v57_v41, %v90_v39  ;;  %v73_v43 = vrot.slane %v57_v41, %v72_v40  ;;  %v747_v53 = vld [vmem:[%s1302_s3] ss:$0 sm:$0xff]  ;;  %v353_v63 = vld [vmem:[#allocation2 + $0x90] sm:$0xff]  ;;  %v354_v0 = vld [vmem:[#allocation2 + $0x98] sm:$0xff] }
  0x1e   :  { %v351_v60 = vld [vmem:[#allocation2 + $0x80] sm:$0xff]  ;;  %v940_v1 = vpack.c.bf16 %v354_v0, %v353_v63  ;;  %v356_v4 = vld [vmem:[#allocation2 + $0xa8] sm:$0xff]  ;;  %v361_v14 = vld [vmem:[#allocation2 + $0xd0] sm:$0xff]  ;;  %v1092_v0 = vmov 1  }
  0x1f   :  { %v936_v62 = vpack.c.bf16 %v352_v61, %v351_v60  ;;  %v355_v2 = vld [vmem:[#allocation2 + $0xa0] sm:$0xff]  ;;  %v360_v10 = vld [vmem:[#allocation2 + $0xc8] sm:$0xff]  ;;  %v362_v15 = vld [vmem:[#allocation2 + $0xd8] sm:$0xff] }
  0x20   :  { %911 = vmatpush3.bf16.msra.mxu1 %v908_v18  ;;  %v944_v5 = vpack.c.bf16 %v356_v4, %v355_v2  ;;  %v956_v16 = vpack.c.bf16 %v362_v15, %v361_v14  ;;  %v363_v17 = vld [vmem:[#allocation2 + $0xe0] sm:$0xff]  ;;  %v364_v18 = vld [vmem:[#allocation2 + $0xe8] sm:$0xff]  ;;  %v365_v20 = vld [vmem:[#allocation2 + $0xf0] sm:$0xff] }
  0x21   :  { %913 = vmatprep.subr.bf16.mxu1 %v912_v21  ;;  %v960_v19 = vpack.c.bf16 %v364_v18, %v363_v17  ;;  %v750_v23 = vld [vmem:[%s1305_s6] ss:$0 sm:$0xff] }
  0x24   :  { %915 = vmatpush3.bf16.msra.mxu1 %v912_v21  ;;  %v366_v21 = vld [vmem:[#allocation2 + $0xf8] sm:$0xff] }
  0x25   :  { %917 = vmatprep.subr.bf16.mxu1 %v916_v24  ;;  %v964_v22 = vpack.c.bf16 %v366_v21, %v365_v20 }
  0x28   :  { %919 = vmatpush3.bf16.msra.mxu1 %v916_v24 }
  0x29   :  { %921 = vmatprep.subr.bf16.mxu1 %v920_v27 }
  0x2c   :  { %923 = vmatpush3.bf16.msra.mxu1 %v920_v27 }
  0x2d   :  { %925 = vmatprep.subr.bf16.mxu1 %v924_v30 }
  0x30   :  { %927 = vmatpush3.bf16.msra.mxu1 %v924_v30 }
  0x31   :  { %929 = vmatprep.subr.bf16.mxu1 %v928_v33 }
  0x34   :  { %931 = vmatpush3.bf16.msra.mxu1 %v928_v33 }
  0x35   :  { %933 = vmatprep.subr.bf16.mxu1 %v932_v36 }
  0x38   :  { %935 = vmatpush3.bf16.msra.mxu1 %v932_v36 }
  0x39   :  { %109 = vadd.xlane.f32.xlu0 %v108_v6  ;;  %v357_v6 = vld [vmem:[#allocation2 + $0xb0] sm:$0xff] }
  0x3e   :  { %112 = vadd.xlane.f32.xlu1 %v111_v8  ;;  %v358_v8 = vld [vmem:[#allocation2 + $0xb8] sm:$0xff] }
  0x3f   :  { %v948_v9 = vpack.c.bf16 %v358_v8, %v357_v6 }
  0x4f   :  { %658 = vperm.xlu1 %987, %v1218_v11   ;;  %655 = vperm.xlu0 %986, %v1220_v12  }
  0x53   :  { %989 = vset.pattern.permute.xlu1 %v1092_v0  ;;  %988 = vset.pattern.permute.xlu0 %v1092_v0 }
  0x54   :  { %675 = vperm.xlu1 %989, %v1218_v11   ;;  %672 = vperm.xlu0 %988, %v1220_v12   ;;  %v1095_v11 = vmov 0.0  }
  0x95   :  { %v81_v44 = vpop.permute.xlu1 %80  ;;  %v63_v45 = vpop.permute.xlu0 %62 }
  0x96   :  { %v92_v46 = vmul.f32 %v91_v42, %v81_v44  ;;  %v74_v47 = vmul.f32 %v73_v43, %v63_v45 }
  0x98   :  { %v94_v50 = vadd.f32 %v92_v46, %v74_v47 }
  0x99   :  { %v86_v48 = vpop.permute.xlu1 %85  ;;  %v68_v49 = vpop.permute.xlu0 %67 }
  0x9a   :  { %v93_v51 = vmul.f32 %v91_v42, %v86_v48  ;;  %v75_v52 = vmul.f32 %v73_v43, %v68_v49  ;;  %v103_v55 = vadd.f32 %v747_v53, %v94_v50 }
  0x9c   :  { %v95_v54 = vadd.f32 %v93_v51, %v75_v52 }
  0x9e   :  { %v104_v56 = vadd.f32 %v747_v53, %v95_v54  ;;  %v751_v54 = vld [vmem:[%s1306_s7] ss:$0 sm:$0xff] }
  0xa0   :  { %v900_v57 = vpack.c.bf16 %v104_v56, %v103_v55 }
  0xa2   :  { %901 = vmatprep.subr.bf16.mxu0 %v900_v57 }
  0xa3   :  { %903 = vmatpush3.bf16.msra.mxu0 %v900_v57  ;;  %v752_v57 = vld [vmem:[%s1307_s8] ss:$0 sm:$0xff] }
  0xa4   :  { %937 = vmatprep.subr.bf16.mxu0 %v936_v62 }
  0xa6   :  { %814 = vmatmul.mubr.msk.f32.vlgmr.msra.gmra.mrb[0].mxu0 %vm107_vm0, %v1208_v7 }
  0xa7   :  { %939 = vmatpush3.bf16.msra.mxu0 %v936_v62 }
  0xa8   :  { %941 = vmatprep.subr.bf16.mxu0 %v940_v1 }
  0xab   :  { %943 = vmatpush3.bf16.msra.mxu0 %v940_v1  ;;  %v754_v1 = vld [vmem:[%s1305_s6 + $0x1] ss:$0 sm:$0xff] }
  0xac   :  { %945 = vmatprep.subr.bf16.mxu0 %v944_v5 }
  0xaf   :  { %947 = vmatpush3.bf16.msra.mxu0 %v944_v5 }
  0xb0   :  { %949 = vmatprep.subr.bf16.mxu0 %v948_v9 }
  0xb3   :  { %951 = vmatpush3.bf16.msra.mxu0 %v948_v9  ;;  %v1093_v9 = vmov 0.0|0.0  }
  0xc6   :  { %v110_v25 = vpop.xlane.xlu0 %109 }
  0xc7   :  { %v223_v27 = vmul.f32 %v750_v23, %v110_v25 }
  0xcb   :  { %v113_v24 = vpop.xlane.xlu1 %112 }
  0xcc   :  { %v224_v26 = vmul.f32 %v750_v23, %v113_v24 }
 0x179   :  { %v815_v58 = vpop.f32.mrb[0].mxu0 }
 0x17a   :  { %v208_v59 = vpop.f32.mrb[1].mxu0 }
 0x17b   :  { %848 = vmatprep.mubr.f32.mxu1 %v208_v59 }
 0x17c   :  { %849 = vmatmul.mubr.f32.vlgmr.msra.gmra.mrb[0].mxu1 %v815_v58 }
 0x17d   :  { %890 = vmatprep.mubr.msk.f32.mxu1 %vm107_vm0, %v1193_v3  ;;  %v359_v3 = vld [vmem:[#allocation2 + $0xc0] sm:$0xff] }
 0x17e   :  { %v952_v13 = vpack.c.bf16 %v360_v10, %v359_v3 }
 0x180   :  { %953 = vmatprep.subr.bf16.mxu0 %v952_v13 }
 0x181   :  { %955 = vmatpush3.bf16.msra.mxu0 %v952_v13 }
 0x182   :  { %957 = vmatprep.subr.bf16.mxu0 %v956_v16 }
 0x185   :  { %959 = vmatpush3.bf16.msra.mxu0 %v956_v16 }
 0x186   :  { %961 = vmatprep.subr.bf16.mxu0 %v960_v19 }
 0x189   :  { %963 = vmatpush3.bf16.msra.mxu0 %v960_v19 }
 0x18a   :  { %965 = vmatprep.subr.bf16.mxu0 %v964_v22 }
 0x18d   :  { %967 = vmatpush3.bf16.msra.mxu0 %v964_v22 }
 0x18e   :  { %972 = vmatprep.subr.bf16.mxu0 %v1093_v9 }
 0x24f   :  { %v850_v28 = vpop.f32.mrb[0].mxu1 }
 0x250   :  { %v297_v29 = vadd.f32 %v850_v28, %v224_v26  ;;  %v291_v30 = vpop.f32.mrb[1].mxu1 }
 0x251   :  { %v292_v31 = vadd.f32 %v291_v30, %v223_v27 }
 0x253   :  { %v300_v32 = vadd.f32 %v297_v29, %v292_v31 }
 0x255   :  { %v301_v33 = vrot.slane %v300_v32, 4 }
 0x257   :  { %v302_v34 = vadd.f32 %v301_v33, %v300_v32  ;;  %v656_v32 = vpop.permute.xlu0 %655  ;;  %v659_v33 = vpop.permute.xlu1 %658 }
 0x258   :  { %vm660_vm6 = vcmp.eq.s32.totalorder %v656_v32, 1  ;;  %vm661_vm7 = vcmp.eq.s32.totalorder %v659_v33, 1 }
 0x259   :  { %v303_v35 = vrot.slane %v302_v34, 2 }
 0x25b   :  { %v304_v36 = vadd.f32 %v303_v35, %v302_v34  ;;  %v758_v35 = vld [vmem:[%s1306_s7 + $0x1] ss:$0 sm:$0xff] }
 0x25d   :  { %v305_v37 = vrot.slane %v304_v36, 1 }
 0x25f   :  { %v306_v38 = vadd.f32 %v305_v37, %v304_v36 }
 0x261   :  { %v307_v39 = vmul.f32 0.0625, %v306_v38  ;;  %v676_v38 = vpop.permute.xlu1 %675 }
 0x262   :  { %vm678_vm4 = vcmp.eq.s32.totalorder %v676_v38, 1 }
 0x263   :  { %v308_v40 = vsub.f32 %v292_v31, %v307_v39  ;;  %v309_v41 = vsub.f32 %v297_v29, %v307_v39  ;;  %v673_v39 = vpop.permute.xlu0 %672 }
 0x264   :  { %vm677_vm5 = vcmp.eq.s32.totalorder %v673_v39, 1 }
 0x265   :  { %v310_v42 = vmul.f32 %v308_v40, %v308_v40  ;;  %v311_v43 = vmul.f32 %v309_v41, %v309_v41 }
 0x267   :  { %v318_v44 = vadd.f32 %v311_v43, %v310_v42 }
 0x269   :  { %v319_v45 = vrot.slane %v318_v44, 4 }
 0x26b   :  { %v320_v46 = vadd.f32 %v319_v45, %v318_v44 }
 0x26d   :  { %v321_v47 = vrot.slane %v320_v46, 2 }
 0x26f   :  { %v322_v48 = vadd.f32 %v321_v47, %v320_v46 }
 0x271   :  { %v323_v49 = vrot.slane %v322_v48, 1 }
 0x273   :  { %v324_v50 = vadd.f32 %v323_v49, %v322_v48 }
 0x275   :  { %v325_v51 = vmul.f32 0.0625, %v324_v50 }
 0x277   :  { %v326_v52 = vadd.f32 1e-05, %v325_v51 }
 0x279   :  { %990 = vrsqrt.f32 %v326_v52 }
 0x283   :  { %v991_v53 = vpop.eup %990 }
 0x284   :  { %v328_v55 = vmul.f32 %v991_v53, %v308_v40  ;;  %v329_v56 = vmul.f32 %v991_v53, %v309_v41  ;;  %v760_v40 = vld [vmem:[%s1307_s8 + $0x1] ss:$0 sm:$0xff] }
 0x286   :  { %v337_v58 = vmul.f32 %v751_v54, %v328_v55  ;;  %v338_v59 = vmul.f32 %v751_v54, %v329_v56  ;;  %v573_v54 = vld [vmem:[%s1308_s9] sm:$0xff]  ;;  %s1096_s9 = smov [#allocation5]  }
 0x287   :  { %s708_s30 = sshll.u32 %s1096_s9, 4  ;;  %s709_s30 = int_to_ptr.vmem [resolvable:$true] %s708_s30 }
 0x288   :  { %v346_v60 = vadd.f32 %v752_v57, %v337_v58  ;;  %v347_v61 = vadd.f32 %v752_v57, %v338_v59  ;;  %s1016_s14 = scalar_lea.vmem %s709_s30, 256  ;;  %p1021_p9 = scmp.lt.s32.totalorder %s709_s30, %s709_s30 }
 0x289   :  { %p1017_p8 = scmp.ne.s32.totalorder %s709_s30, %s1016_s14  ;;  %p1022_p10 = scmp.lt.s32.totalorder %s1016_s14, %s1016_s14 }
 0x28a   :  { %v348_v62 = vmax.f32 %v346_v60, 0.0  ;;  %v349_v63 = vmax.f32 %v347_v61, 0.0 }
 0x28b   :  { %p1023_p11 = por %p1022_p10, %p1021_p9 }
 0x28c   :  { %883 = vmatprep.mubr.f32.mxu0 %v348_v62 }
 0x28d   :  { %884 = vmatmul.mubr.f32.vlgmr.msra.gmra.mrb[2].mxu0 %v349_v63  ;;  %p1024_p12 = pnand %p1023_p11, %p1017_p8 }
 0x28e   :  { %897 = vmatprep.mubr.msk.f32.mxu0 %vm1094_vm3, %v1095_v11 }
 0x360   :  { %v885_v2 = vpop.f32.mrb[2].mxu0 }
 0x361   :  { %v447_v4 = vadd.f32 %v885_v2, %v754_v1  ;;  %v441_v5 = vpop.f32.mrb[3].mxu0 }
 0x362   :  { %v442_v6 = vadd.f32 %v754_v1, %v441_v5 }
 0x364   :  { %v968_v8 = vpack.c.bf16 %v447_v4, %v442_v6 }
 0x366   :  { %969 = vmatprep.subr.bf16.mxu1 %v968_v8 }
 0x367   :  { %971 = vmatpush3.bf16.msra.mxu1 %v968_v8 }
 0x36a   :  { %891 = vmatmul.mubr.msk.f32.vlgmr.msra.gmra.mrb[2].mxu1 %vm107_vm0, %v1208_v7 }
 0x43d   :  { %v892_v12 = vpop.f32.mrb[2].mxu1 }
 0x43e   :  { %v516_v3 = vpop.f32.mrb[3].mxu1 }
 0x43f   :  { %v525_v10 = vadd.f32 %v892_v12, %v516_v3 }
 0x441   :  { %v526_v13 = vrot.slane %v525_v10, 4 }
 0x443   :  { %v527_v14 = vadd.f32 %v526_v13, %v525_v10 }
 0x445   :  { %v528_v15 = vrot.slane %v527_v14, 2 }
 0x447   :  { %v529_v16 = vadd.f32 %v528_v15, %v527_v14 }
 0x449   :  { %v530_v17 = vrot.slane %v529_v16, 1 }
 0x44b   :  { %v531_v18 = vadd.f32 %v530_v17, %v529_v16 }
 0x44d   :  { %v532_v19 = vmul.f32 0.0625, %v531_v18 }
 0x44f   :  { %v533_v20 = vsub.f32 %v516_v3, %v532_v19  ;;  %v534_v21 = vsub.f32 %v892_v12, %v532_v19 }
 0x451   :  { %v535_v22 = vmul.f32 %v533_v20, %v533_v20  ;;  %v536_v23 = vmul.f32 %v534_v21, %v534_v21 }
 0x453   :  { %v539_v7 = vadd.f32 %v536_v23, %v535_v22 }
 0x455   :  { %v540_v24 = vrot.slane %v539_v7, 4 }
 0x457   :  { %v541_v25 = vadd.f32 %v540_v24, %v539_v7 }
 0x459   :  { %v542_v26 = vrot.slane %v541_v25, 2 }
 0x45b   :  { %v543_v27 = vadd.f32 %v542_v26, %v541_v25 }
 0x45d   :  { %v544_v28 = vrot.slane %v543_v27, 1 }
 0x45f   :  { %v545_v29 = vadd.f32 %v544_v28, %v543_v27 }
 0x461   :  { %v546_v30 = vmul.f32 0.0625, %v545_v29 }
 0x463   :  { %v547_v31 = vadd.f32 1e-05, %v546_v30 }
 0x465   :  { %992 = vrsqrt.f32 %v547_v31 }
 0x46f   :  { %v993_v34 = vpop.eup %992 }
 0x470   :  { %v549_v36 = vmul.f32 %v993_v34, %v533_v20  ;;  %v550_v37 = vmul.f32 %v993_v34, %v534_v21 }
 0x472   :  { %v559_v41 = vmul.f32 %v758_v35, %v549_v36  ;;  %v560_v42 = vmul.f32 %v758_v35, %v550_v37 }
 0x474   :  { %v569_v43 = vadd.f32 %v760_v40, %v559_v41  ;;  %v570_v44 = vadd.f32 %v760_v40, %v560_v42 }
 0x476   :  { %v662_v45 = vsel %vm660_vm6, %v569_v43, -inf  ;;  %v663_v46 = vsel %vm661_vm7, %v570_v44, -inf  ;;  %571 = vst [vmem:[#allocation5] sm:$0xff] %v569_v43  ;;  %572 = vst [vmem:[#allocation5 + $0x8] sm:$0xff] %v570_v44  ;;  %v680_v47 = vsel %vm678_vm4, %v570_v44, -inf  ;;  %v679_v48 = vsel %vm677_vm5, %v569_v43, -inf }
 0x477   :  { %v664_v49 = vmax.f32 %v662_v45, %v663_v46  ;;  %v681_v50 = vmax.f32 %v679_v48, %v680_v47  ;;  %v973_v51 = vpack.c.bf16 %v570_v44, %v569_v43 }
 0x479   :  { %v665_v52 = vrot.slane %v664_v49, 4  ;;  %v682_v53 = vrot.slane %v681_v50, 4  ;;  %974 = vmatpush3.bf16.msra.mxu0 %v973_v51 }
 0x47b   :  { %v666_v55 = vmax.f32 %v664_v49, %v665_v52  ;;  %v683_v56 = vmax.f32 %v681_v50, %v682_v53 }
 0x47c   :  { %898 = vmatmul.mubr.msk.f32.vlgmr.msra.gmra.mrb[4].mxu0 %vm107_vm0, %v573_v54 }
 0x47d   :  { %v684_v57 = vrot.slane %v683_v56, 2  ;;  %v667_v58 = vrot.slane %v666_v55, 2 }
 0x47f   :  { %v685_v59 = vmax.f32 %v683_v56, %v684_v57  ;;  %v668_v60 = vmax.f32 %v666_v55, %v667_v58 }
 0x481   :  { %v686_v61 = vrot.slane %v685_v59, 1  ;;  %v669_v62 = vrot.slane %v668_v60, 1 }
 0x483   :  { %v687_v63 = vmax.f32 %v685_v59, %v686_v61  ;;  %v670_v0 = vmax.f32 %v668_v60, %v669_v62 }
 0x485   :  { %v689_v1 = vsel %vm688_vm8, %v670_v0, %v687_v63 }
 0x486   :  { %v691_v2 = vsel %vm690_vm9, %v689_v1, 0.0 }
 0x487   :  { %v693_v4 = vsel %vm692_vm10, %v691_v2, 0.0 }
 0x488   :  { %v695_v5 = vsel %vm694_vm11, %v693_v4, 0.0 }
 0x489   :  { %v697_v6 = vsel %vm696_vm12, %v695_v5, 0.0 }
 0x48a   :  { %v699_v8 = vsel %vm698_vm13, %v697_v6, 0.0 }
 0x48b   :  { %v701_v9 = vsel %vm700_vm14, %v699_v8, 0.0 }
 0x48c   :  { %702 = vst [vmem:[#allocation8] sm:$0xff] %v701_v9 }
 0x48d   :  { %1027 = shalt.err (!%p1024_p12)
}
 0x48e   :  { %s1028_s0 = scalar_lea.hbm %s1310_s11, 256 }
 0x48f   :  { %p1029_p13 = scmp.ne.s32.totalorder %s1310_s11, %s1028_s0  ;;  %p1032_p0 = scmp.lt.u32.totalorder %s1028_s0, %s1310_s11 }
 0x491   :  { %p1034_p1 = pnand %p1032_p0, %p1029_p13 }
 0x493   :  { %1037 = shalt.err (!%p1034_p1)
}
 0x494   :  { %714 = dma.vmem_to_hbm [thread:$0]  %s709_s30, 256, %s1310_s11, [#allocation4], %s1089_s18, %s1089_s18, %s1090_s19  }
 0x495   :  { %s1097_s2 = smov [#allocation6]   ;;  %s1098_s22 = smov [#allocation8]  }
 0x496   :  { %s721_s3 = sshll.u32 %s1097_s2, 4  ;;  %s731_s23 = sshll.u32 %s1098_s22, 4  ;;  %s722_s3 = int_to_ptr.vmem [resolvable:$true] %s721_s3  ;;  %s732_s23 = int_to_ptr.vmem [resolvable:$true] %s731_s23 }
 0x497   :  { %s1038_s24 = scalar_lea.vmem %s722_s3, 128  ;;  %p1043_p3 = scmp.lt.s32.totalorder %s722_s3, %s722_s3 }
 0x498   :  { %p1039_p2 = scmp.ne.s32.totalorder %s722_s3, %s1038_s24  ;;  %p1044_p4 = scmp.lt.s32.totalorder %s1038_s24, %s1038_s24 }
 0x49a   :  { %p1045_p5 = por %p1044_p4, %p1043_p3 }
 0x49c   :  { %p1046_p6 = pnand %p1045_p5, %p1039_p2 }
 0x54f   :  { %v643_v11 = vpop.f32.mrb[4].mxu0 }
 0x550   :  { %647 = vst [vmem:[#allocation6] sm:$0xff] %v643_v11  ;;  %v899_v12 = vpop.f32.mrb[5].mxu0 }
 0x551   :  { %1049 = shalt.err (!%p1046_p6)
}
 0x552   :  { %s1050_s11 = scalar_lea.hbm %s1311_s12, 128 }
 0x553   :  { %p1051_p7 = scmp.ne.s32.totalorder %s1311_s12, %s1050_s11  ;;  %p1054_p8 = scmp.lt.u32.totalorder %s1050_s11, %s1311_s12 }
 0x555   :  { %p1056_p9 = pnand %p1054_p8, %p1051_p7 }
 0x557   :  { %1059 = shalt.err (!%p1056_p9)
}
 0x558   :  { %724 = dma.vmem_to_hbm [thread:$0]  %s722_s3, 128, %s1311_s12, [#allocation7]  }
 0x559   :  { %s1060_s29 = scalar_lea.vmem %s732_s23, 128  ;;  %p1065_p11 = scmp.lt.s32.totalorder %s732_s23, %s732_s23 }
 0x55a   :  { %p1061_p10 = scmp.ne.s32.totalorder %s732_s23, %s1060_s29  ;;  %p1066_p12 = scmp.lt.s32.totalorder %s1060_s29, %s1060_s29 }
 0x55c   :  { %p1067_p13 = por %p1066_p12, %p1065_p11 }
 0x55e   :  { %p1068_p0 = pnand %p1067_p13, %p1061_p10 }
 0x560   :  { %1071 = shalt.err (!%p1068_p0)
}
 0x561   :  { %s1072_s9 = scalar_lea.hbm %s1312_s13, 128 }
 0x562   :  { %p1073_p1 = scmp.ne.s32.totalorder %s1312_s13, %s1072_s9  ;;  %p1076_p2 = scmp.lt.u32.totalorder %s1072_s9, %s1312_s13 }
 0x564   :  { %p1078_p3 = pnand %p1076_p2, %p1073_p1 }
 0x566   :  { %1081 = shalt.err (!%p1078_p3)
}
 0x567   :  { %734 = dma.vmem_to_hbm [thread:$0]  %s732_s23, 128, %s1312_s13, [#allocation7]  }
 0x568   :  { %1084 = dma.done.wait [#allocation4], 256  }
 0x569   :  { %1085 = vsyncadd [#allocation4], 4294967040 }
 0x56a   :  { %1086 = dma.done.wait [#allocation7], 256  }
 0x56b   :  { %1087 = vsyncadd [#allocation7], 4294967040 }
 0x56c   :  { %744 = vsyncpa [#allocation3], 1 }
 0x56d   :  { %745 = vsyncpa [#allocation4], 1 }
 0x56e   :  { %746 = vsyncpa [#allocation7], 1 }

</bundles_post_ra>
